<compile_context>
chip_gen: v7x
topology: tpu7x:2x2x1
jax: 0.10.0
libtpu: 0.0.40
codegen_flags: <defaults>
</compile_context>

<pallas_src>
import jax
import jax.numpy as jnp
from jax.experimental import pallas as pl
from jax.experimental.pallas import tpu as pltpu

LEAKY_SLOPE = 0.01  # torch.nn.LeakyReLU default negative_slope


def _round_up(n: int, m: int) -> int:
    return ((n + m - 1) // m) * m


def _make_split_activation_kernel(latent_dim: int, use_activation: bool):
    """Kernel over one (TB, 2*latent_dim) batch tile of mu_logvar."""

    def kernel(x_ref, mu_ref, logvar_ref):
        x = x_ref[...]                       # (TB, 2*D) f32 in VMEM
        mu = x[:, :latent_dim]               # view(-1, 2, D)[:, 0, :]
        logvar = x[:, latent_dim:]           # view(-1, 2, D)[:, 1, :]
        if use_activation:
            # Hardtanh(mu)
            mu = jnp.clip(mu, -1.0, 1.0)
            # -LeakyReLU(-logvar): pass negatives, scale positives by slope
            logvar = jnp.where(logvar < 0, logvar, LEAKY_SLOPE * logvar)
        mu_ref[...] = mu
        logvar_ref[...] = logvar

    return kernel


def split_activation_forward(mu_logvar,
                             latent_space_dim: int,
                             use_latent_space_activation: bool = False,
                             block_batch: int = 256):
    """Pallas implementation of SplitActivation.forward.

    mu_logvar: any shape that flattens to (-1, 2*latent_space_dim)
    returns (mu, logvar), each (N, latent_space_dim) float32.
    """
    D = latent_space_dim
    x = jnp.asarray(mu_logvar, jnp.float32).reshape(-1, 2 * D)
    B = x.shape[0]

    # Batch tile: sublane-aligned (multiple of 8), capped at block_batch.
    TB = min(block_batch, _round_up(B, 8))
    B_pad = _round_up(B, TB)
    if B_pad != B:
        x = jnp.pad(x, ((0, B_pad - B), (0, 0)))
    grid = (B_pad // TB,)

    kernel = _make_split_activation_kernel(D, use_latent_space_activation)

    # Advisory cost: a couple of VPU ops per element; bytes = read + 2 writes.
    cost = pl.CostEstimate(
        flops=4 * B_pad * 2 * D,
        transcendentals=0,
        bytes_accessed=4 * (B_pad * 2 * D + 2 * B_pad * D),
    )

    mu, logvar = pl.pallas_call(
        kernel,
        out_shape=(
            jax.ShapeDtypeStruct((B_pad, D), jnp.float32),   # mu
            jax.ShapeDtypeStruct((B_pad, D), jnp.float32),   # logvar
        ),
        grid=grid,
        in_specs=[pl.BlockSpec((TB, 2 * D), lambda i: (i, 0))],
        out_specs=(
            pl.BlockSpec((TB, D), lambda i: (i, 0)),
            pl.BlockSpec((TB, D), lambda i: (i, 0)),
        ),
        compiler_params=pltpu.CompilerParams(
            dimension_semantics=("parallel",),
        ),
        cost_estimate=cost,
    )(x)

    if B_pad != B:
        mu = mu[:B]
        logvar = logvar[:B]
    return mu, logvar


def _reference_forward(mu_logvar, latent_space_dim, use_latent_space_activation):
    """Pure-JAX reference mirroring the PyTorch module."""
    x = jnp.asarray(mu_logvar, jnp.float32).reshape(-1, 2, latent_space_dim)
    mu = x[:, 0, :]
    logvar = x[:, 1, :]
    if use_latent_space_activation:
        mu = jnp.clip(mu, -1.0, 1.0)
        logvar = -jax.nn.leaky_relu(-logvar, LEAKY_SLOPE)
    return mu, logvar


if __name__ == "__main__":
    key = jax.random.PRNGKey(0)

    # Case 1: lane-dense latent dim (128) with the activation branch enabled.
    D1, B1 = 128, 16
    k1, k2 = jax.random.split(key)
    x1 = 3.0 * jax.random.normal(k1, (B1, 2 * D1), jnp.float32)
    mu1, lv1 = split_activation_forward(x1, D1, use_latent_space_activation=True)
    jax.block_until_ready((mu1, lv1))
    mu1_r, lv1_r = _reference_forward(x1, D1, True)
    assert jnp.allclose(mu1, mu1_r, atol=1e-6)
    assert jnp.allclose(lv1, lv1_r, atol=1e-6)

    # Case 2: small latent dim (8), no activation, batch not a multiple of 8
    # (exercises wrapper padding + the plain split path).
    D2, B2 = 8, 5
    x2 = jax.random.normal(k2, (B2, 2 * D2), jnp.float32)
    mu2, lv2 = split_activation_forward(x2, D2, use_latent_space_activation=False)
    jax.block_until_ready((mu2, lv2))
    mu2_r, lv2_r = _reference_forward(x2, D2, False)
    assert jnp.allclose(mu2, mu2_r, atol=1e-6)
    assert jnp.allclose(lv2, lv2_r, atol=1e-6)

    print("KERNEL_OK")
</pallas_src>

<mosaic_0001>
module attributes {stable_mosaic.version = 11 : i64} {
  func.func @kernel(%arg0: i32, %arg1: memref<16x256xf32, #tpu.memory_space<vmem>>, %arg2: memref<16x128xf32, #tpu.memory_space<vmem>>, %arg3: memref<16x128xf32, #tpu.memory_space<vmem>>) attributes {dimension_semantics = [#tpu.dimension_semantics<parallel>], iteration_bounds = array<i64: 1>, scalar_prefetch = 0 : i64, scratch_operands = 0 : i64, tpu.core_type = #tpu.core_type<tc>, window_params = [{transform_indices = @transform_0, window_bounds = array<i64: 16, 256>}, {transform_indices = @transform_1, window_bounds = array<i64: 16, 128>}, {transform_indices = @transform_2, window_bounds = array<i64: 16, 128>}]} {
    %c0 = arith.constant 0 : index
    %c0_0 = arith.constant 0 : index
    %0 = vector.load %arg1[%c0, %c0_0] : memref<16x256xf32, #tpu.memory_space<vmem>>, vector<16x256xf32>
    %1 = vector.extract_strided_slice %0 {offsets = [0, 0], sizes = [16, 128], strides = [1, 1]} : vector<16x256xf32> to vector<16x128xf32>
    %2 = vector.extract_strided_slice %0 {offsets = [0, 128], sizes = [16, 128], strides = [1, 1]} : vector<16x256xf32> to vector<16x128xf32>
    %cst = arith.constant -1.000000e+00 : f32
    %cst_1 = arith.constant 1.000000e+00 : f32
    %3 = vector.broadcast %cst : f32 to vector<16x128xf32>
    %4 = arith.maximumf %3, %1 : vector<16x128xf32>
    %5 = vector.broadcast %cst_1 : f32 to vector<16x128xf32>
    %6 = arith.minimumf %5, %4 : vector<16x128xf32>
    %cst_2 = arith.constant 0.000000e+00 : f32
    %7 = vector.broadcast %cst_2 : f32 to vector<16x128xf32>
    %8 = arith.cmpf olt, %2, %7 : vector<16x128xf32>
    %cst_3 = arith.constant 0.00999999977 : f32
    %9 = vector.broadcast %cst_3 : f32 to vector<16x128xf32>
    %10 = arith.mulf %9, %2 : vector<16x128xf32>
    %11 = arith.select %8, %2, %10 : vector<16x128xi1>, vector<16x128xf32>
    %c0_4 = arith.constant 0 : index
    %c0_5 = arith.constant 0 : index
    %12 = vector.load %arg2[%c0_4, %c0_5] : memref<16x128xf32, #tpu.memory_space<vmem>>, vector<16x128xf32>
    tpu.vector_store %arg2[%c0_4, %c0_5], %6 {strides = array<i32>} : memref<16x128xf32, #tpu.memory_space<vmem>>, vector<16x128xf32>,
    %c0_6 = arith.constant 0 : index
    %c0_7 = arith.constant 0 : index
    %13 = vector.load %arg3[%c0_6, %c0_7] : memref<16x128xf32, #tpu.memory_space<vmem>>, vector<16x128xf32>
    tpu.vector_store %arg3[%c0_6, %c0_7], %11 {strides = array<i32>} : memref<16x128xf32, #tpu.memory_space<vmem>>, vector<16x128xf32>,
    return
  }
  func.func @transform_0(%arg0: i32) -> (i32, i32) {
    %c0_i32 = arith.constant 0 : i32
    %c0_i32_0 = arith.constant 0 : i32
    return %arg0, %c0_i32 : i32, i32
  }
  func.func @transform_1(%arg0: i32) -> (i32, i32) {
    %c0_i32 = arith.constant 0 : i32
    %c0_i32_0 = arith.constant 0 : i32
    return %arg0, %c0_i32 : i32, i32
  }
  func.func @transform_2(%arg0: i32) -> (i32, i32) {
    %c0_i32 = arith.constant 0 : i32
    %c0_i32_0 = arith.constant 0 : i32
    return %arg0, %c0_i32 : i32, i32
  }
}

</mosaic_0001>

<bundles_post_ra>
// kernel: tpu_custom_call.1
= control target key start
LH: loop header
LB: loop body
LE: loop exit
PB: predicated region body
PF: predicated region fallthrough
CT: control target
= control target key end

     0   :  { %8 = vsyncpa [#allocation3], 0  ;;  %s223_s0 = inlined_call_operand.hbm [shape: f32[16,256], index: 0, kind: input, shape index: {}]   ;;  %s224_s1 = inlined_call_operand.hbm [shape: f32[16,128], index: 1, kind: output, shape index: {0}]   ;;  %s225_s2 = inlined_call_operand.hbm [shape: f32[16,128], index: 2, kind: output, shape index: {1}]  }
   0x1   :  { %9 = vsyncpa [#allocation4], 0 }
   0x2   :  { %10 = vsyncpa [#allocation7], 0  ;;  %s158_s9 = smov [#allocation2]   ;;  %s86_s13 = scalar_lea.hbm %s223_s0, 512 }
   0x3   :  { %s16_s10 = sshll.u32 %s158_s9, 4  ;;  %p87_p0 = scmp.ne.s32.totalorder %s223_s0, %s86_s13  ;;  %s17_s10 = int_to_ptr.vmem [resolvable:$true] %s16_s10 }
   0x4   :  { %p90_p1 = scmp.lt.u32.totalorder %s86_s13, %s223_s0 }
   0x6   :  { %p92_p2 = pnand %p90_p1, %p87_p0 }
   0x8   :  { %95 = shalt.err (!%p92_p2)
}
   0x9   :  { %s96_s18 = scalar_lea.vmem %s17_s10, 512  ;;  %p101_p4 = scmp.lt.s32.totalorder %s17_s10, %s17_s10 }
   0xa   :  { %p97_p3 = scmp.ne.s32.totalorder %s17_s10, %s96_s18  ;;  %p102_p5 = scmp.lt.s32.totalorder %s96_s18, %s96_s18 }
   0xc   :  { %p103_p6 = por %p102_p5, %p101_p4 }
   0xe   :  { %p104_p7 = pnand %p103_p6, %p97_p3 }
  0x10   :  { %107 = shalt.err (!%p104_p7)
}
  0x11   :  { %s159_s19 = smov 256   ;;  %s160_s20 = smov 16  }
  0x12   :  { %22 = dma.hbm_to_vmem [thread:$0]  %s223_s0, 512, %s17_s10, [#allocation3], %s159_s19, %s159_s19, %s160_s20  }
  0x13   :  { %152 = dma.done.wait [#allocation3], 512  }
  0x14   :  { %153 = vsyncadd [#allocation3], 4294966784  ;;  %s161_s23 = smov [#allocation5]   ;;  %v26_v0 = vld [vmem:[#allocation2] sm:$0xff]  ;;  %v28_v1 = vld [vmem:[#allocation2 + $0x10] sm:$0xff]  ;;  %s162_s25 = smov [#allocation6]  }
  0x15   :  { %s49_s24 = sshll.u32 %s161_s23, 4  ;;  %v27_v2 = vld [vmem:[#allocation2 + $0x8] sm:$0xff]  ;;  %s61_s26 = sshll.u32 %s162_s25, 4  ;;  %v77_v3 = vclamps-f32 %v26_v0, 1.0  ;;  %v78_v4 = vclamps-f32 %v28_v1, 1.0  ;;  %v29_v6 = vld [vmem:[#allocation2 + $0x18] sm:$0xff]  ;;  %s50_s24 = int_to_ptr.vmem [resolvable:$true] %s49_s24  ;;  %s192_s26 = int_to_ptr.vmem [resolvable:$true] %s61_s26 }
  0x16   :  { %vm34_vm0 = vcmp.lt.f32.partialorder %v27_v2, 0.0  ;;  %v36_v5 = vmul.f32 0.01, %v27_v2  ;;  %vm35_vm1 = vcmp.lt.f32.partialorder %v29_v6, 0.0  ;;  %v37_v7 = vmul.f32 0.01, %v29_v6  ;;  %p113_p9 = scmp.lt.s32.totalorder %s50_s24, %s50_s24 }
  0x17   :  { %40 = vst [vmem:[#allocation5] sm:$0xff] %v77_v3  ;;  %41 = vst [vmem:[#allocation5 + $0x8] sm:$0xff] %v78_v4  ;;  %s108_s0 = scalar_lea.vmem %s50_s24, 256 }
  0x18   :  { %v38_v8 = vsel %vm34_vm0, %v27_v2, %v36_v5  ;;  %v39_v9 = vsel %vm35_vm1, %v29_v6, %v37_v7  ;;  %p109_p8 = scmp.ne.s32.totalorder %s50_s24, %s108_s0  ;;  %p114_p10 = scmp.lt.s32.totalorder %s108_s0, %s108_s0 }
  0x19   :  { %42 = vst [vmem:[#allocation6] sm:$0xff] %v38_v8 }
  0x1a   :  { %p115_p11 = por %p114_p10, %p113_p9 }
  0x1c   :  { %p116_p12 = pnand %p115_p11, %p109_p8 }
  0x1e   :  { %119 = shalt.err (!%p116_p12)
}
  0x1f   :  { %s120_s29 = scalar_lea.hbm %s224_s1, 256 }
  0x20   :  { %p121_p13 = scmp.ne.s32.totalorder %s224_s1, %s120_s29  ;;  %p124_p0 = scmp.lt.u32.totalorder %s120_s29, %s224_s1 }
  0x22   :  { %p126_p1 = pnand %p124_p0, %p121_p13 }
  0x24   :  { %129 = shalt.err (!%p126_p1)
}
  0x25   :  { %s163_s6 = smov 128   ;;  %s164_s7 = smov 8   ;;  %43 = vst [vmem:[#allocation6 + $0x8] sm:$0xff] %v39_v9 }
  0x26   :  { %55 = dma.vmem_to_hbm [thread:$0]  %s50_s24, 256, %s224_s1, [#allocation4], %s163_s6, %s163_s6, %s164_s7  }
  0x27   :  { %s130_s10 = scalar_lea.vmem %s192_s26, 256  ;;  %p135_p3 = scmp.lt.s32.totalorder %s192_s26, %s192_s26 }
  0x28   :  { %p131_p2 = scmp.ne.s32.totalorder %s192_s26, %s130_s10  ;;  %p136_p4 = scmp.lt.s32.totalorder %s130_s10, %s130_s10 }
  0x2a   :  { %p137_p5 = por %p136_p4, %p135_p3 }
  0x2c   :  { %p138_p6 = pnand %p137_p5, %p131_p2 }
  0x2e   :  { %141 = shalt.err (!%p138_p6)
}
  0x2f   :  { %s142_s13 = scalar_lea.hbm %s225_s2, 256 }
  0x30   :  { %p143_p7 = scmp.ne.s32.totalorder %s225_s2, %s142_s13  ;;  %p146_p8 = scmp.lt.u32.totalorder %s142_s13, %s225_s2 }
  0x32   :  { %p148_p9 = pnand %p146_p8, %p143_p7 }
  0x34   :  { %151 = shalt.err (!%p148_p9)
}
  0x35   :  { %67 = dma.vmem_to_hbm [thread:$0]  %s192_s26, 256, %s225_s2, [#allocation7], %s163_s6, %s163_s6, %s164_s7  }
  0x36   :  { %154 = dma.done.wait [#allocation4], 256  }
  0x37   :  { %155 = vsyncadd [#allocation4], 4294967040 }
  0x38   :  { %156 = dma.done.wait [#allocation7], 256  }
  0x39   :  { %157 = vsyncadd [#allocation7], 4294967040 }
  0x3a   :  { %74 = vsyncpa [#allocation3], 1 }
  0x3b   :  { %75 = vsyncpa [#allocation4], 1 }
  0x3c   :  { %76 = vsyncpa [#allocation7], 1 }

</bundles_post_ra>
